<compile_context>
chip_gen: v6e
topology: v6e:2x2x1
jax: 0.10.0
libtpu: 0.0.40
codegen_flags: <defaults>
</compile_context>

<pallas_src>
import math
import functools

import jax
import jax.numpy as jnp
from jax import lax
from jax.experimental import pallas as pl
from jax.experimental.pallas import tpu as pltpu


def _mha_kernel(q_ref, k_ref, v_ref, mask_ref,
                wq_ref, bq_ref, wk_ref, bk_ref, wv_ref, bv_ref,
                wo_ref, bo_ref, gamma_ref, beta_ref,
                out_ref, attn_ref, *, n_heads, eps):
    """One batch per grid step; all heads handled inside the kernel."""
    f32 = jnp.float32
    bf16 = jnp.bfloat16

    q_in = q_ref[0]                                   # (Lq, d_model) bf16 (also residual)
    k_in = k_ref[0]                                   # (Lk, d_model) bf16
    v_in = v_ref[0]                                   # (Lk, d_model) bf16
    masked = mask_ref[0].astype(jnp.int32) != 0       # (Lq, Lk) bool, shared by all heads
    neg_inf = jnp.float32(-1e9)

    out_acc = None
    for h in range(n_heads):                          # static unroll; weights resident in VMEM
        # Per-head projections: bf16 x bf16 on the MXU, f32 accumulation.
        # 1/sqrt(d_k) is already folded into wq/bq, so no score-scaling pass.
        q_h = jnp.dot(q_in, wq_ref[h], preferred_element_type=f32) + bq_ref[h]   # (Lq, d_k)
        k_h = jnp.dot(k_in, wk_ref[h], preferred_element_type=f32) + bk_ref[h]   # (Lk, d_k)
        v_h = jnp.dot(v_in, wv_ref[h], preferred_element_type=f32) + bv_ref[h]   # (Lk, d_v)

        # scores = q_h @ k_h^T : contract d_k of both operands, no explicit transpose.
        scores = lax.dot_general(
            q_h.astype(bf16), k_h.astype(bf16),
            dimension_numbers=(((1,), (1,)), ((), ())),
            preferred_element_type=f32)                                            # (Lq, Lk)
        scores = jnp.where(masked, neg_inf, scores)    # masked_fill_(attn_mask, -1e9)

        # Numerically stable softmax; the divide goes to the EUP via approx reciprocal.
        mx = jnp.max(scores, axis=-1, keepdims=True)
        e = jnp.exp(scores - mx)
        denom = jnp.sum(e, axis=-1, keepdims=True)
        attn = e * pl.reciprocal(denom, approx=True)
        attn_ref[0, h] = attn.astype(attn_ref.dtype)

        # context = attn @ V, folded straight into the output projection so the
        # concatenated (Lq, H*d_v) context never touches HBM.
        ctx_h = jnp.dot(attn.astype(bf16), v_h.astype(bf16),
                        preferred_element_type=f32)                                # (Lq, d_v)
        proj_h = jnp.dot(ctx_h.astype(bf16), wo_ref[h],
                         preferred_element_type=f32)                               # (Lq, d_model)
        out_acc = proj_h if out_acc is None else out_acc + proj_h

    # Output linear bias + residual (= original Q), then LayerNorm over d_model.
    y = out_acc + bo_ref[...] + q_in.astype(f32)
    mean = jnp.mean(y, axis=-1, keepdims=True)
    cent = y - mean
    var = jnp.mean(cent * cent, axis=-1, keepdims=True)
    y = cent * lax.rsqrt(var + jnp.float32(eps))
    y = y * gamma_ref[...] + beta_ref[...]
    out_ref[0] = y.astype(out_ref.dtype)


def multi_head_attention(Q, K, V, attn_mask, params, *, n_heads, d_k, d_v,
                         sdpa_d_k=64, eps=1e-5):
    """Q,K,V: (B, L, d_model) ; attn_mask: (B, Lq, Lk) bool (True = masked out).

    params layout (already per-head):
      w_q/w_k : (H, d_model, d_k)   b_q/b_k : (H, d_k)
      w_v     : (H, d_model, d_v)   b_v     : (H, d_v)
      w_o     : (H, d_v, d_model)   b_o     : (d_model,)
      gamma/beta : (d_model,)
    """
    B, Lq, d_model = Q.shape
    Lk = K.shape[1]

    # NOTE: the PyTorch module instantiates ScaledDotProductAttention() with its
    # *default* d_k=64 (not self.d_k), so scores are scaled by 1/sqrt(64) regardless
    # of the real head dim. `sdpa_d_k` replicates that quirk; pass d_k to "fix" it.
    scale = jnp.float32(1.0 / math.sqrt(float(sdpa_d_k)))

    # bf16 activations / matmul weights in HBM; f32 biases and LayerNorm params.
    q = Q.astype(jnp.bfloat16)
    k = K.astype(jnp.bfloat16)
    v = V.astype(jnp.bfloat16)
    m = attn_mask.astype(jnp.int8)                       # (B, Lq, Lk), NOT repeated per head

    wq = (params["w_q"] * scale).astype(jnp.bfloat16)    # scale folded into W_Q
    bq = (params["b_q"] * scale).astype(jnp.float32).reshape(n_heads, 1, d_k)
    wk = params["w_k"].astype(jnp.bfloat16)
    bk = params["b_k"].astype(jnp.float32).reshape(n_heads, 1, d_k)
    wv = params["w_v"].astype(jnp.bfloat16)
    bv = params["b_v"].astype(jnp.float32).reshape(n_heads, 1, d_v)
    wo = params["w_o"].astype(jnp.bfloat16)
    bo = params["b_o"].astype(jnp.float32).reshape(1, d_model)
    gamma = params["gamma"].astype(jnp.float32).reshape(1, d_model)
    beta = params["beta"].astype(jnp.float32).reshape(1, d_model)

    kernel = functools.partial(_mha_kernel, n_heads=n_heads, eps=eps)

    def _resident(shape):
        # Constant index_map -> block DMA'd once and kept resident across the grid.
        n = len(shape)
        return pl.BlockSpec(shape, lambda b: (0,) * n)

    out, attn = pl.pallas_call(
        kernel,
        out_shape=(
            jax.ShapeDtypeStruct((B, Lq, d_model), jnp.float32),
            jax.ShapeDtypeStruct((B, n_heads, Lq, Lk), jnp.float32),
        ),
        grid_spec=pltpu.PrefetchScalarGridSpec(
            num_scalar_prefetch=0,
            grid=(B,),
            in_specs=[
                pl.BlockSpec((1, Lq, d_model), lambda b: (b, 0, 0)),
                pl.BlockSpec((1, Lk, d_model), lambda b: (b, 0, 0)),
                pl.BlockSpec((1, Lk, d_model), lambda b: (b, 0, 0)),
                pl.BlockSpec((1, Lq, Lk), lambda b: (b, 0, 0)),
                _resident((n_heads, d_model, d_k)),   # wq
                _resident((n_heads, 1, d_k)),         # bq
                _resident((n_heads, d_model, d_k)),   # wk
                _resident((n_heads, 1, d_k)),         # bk
                _resident((n_heads, d_model, d_v)),   # wv
                _resident((n_heads, 1, d_v)),         # bv
                _resident((n_heads, d_v, d_model)),   # wo
                _resident((1, d_model)),              # bo
                _resident((1, d_model)),              # gamma
                _resident((1, d_model)),              # beta
            ],
            out_specs=[
                pl.BlockSpec((1, Lq, d_model), lambda b: (b, 0, 0)),
                pl.BlockSpec((1, n_heads, Lq, Lk), lambda b: (b, 0, 0, 0)),
            ],
        ),
        compiler_params=pltpu.CompilerParams(
            dimension_semantics=("parallel",),        # batch axis shards across TCs on v7x
        ),
    )(q, k, v, m, wq, bq, wk, bk, wv, bv, wo, bo, gamma, beta)

    return out, attn


def _reference_mha(Q, K, V, attn_mask, params, *, n_heads, d_k, d_v,
                   sdpa_d_k=64, eps=1e-5):
    """f32 reference with the same bf16-rounded operands the kernel consumes."""
    f32 = jnp.float32
    bf = lambda x: x.astype(jnp.bfloat16).astype(f32)
    scale = 1.0 / math.sqrt(float(sdpa_d_k))

    Qr, Kr, Vr = bf(Q), bf(K), bf(V)
    wq = bf(params["w_q"] * scale); bq = (params["b_q"] * scale).astype(f32)
    wk = bf(params["w_k"]);         bk = params["b_k"].astype(f32)
    wv = bf(params["w_v"]);         bv = params["b_v"].astype(f32)
    wo = bf(params["w_o"]);         bo = params["b_o"].astype(f32)
    gamma = params["gamma"].astype(f32); beta = params["beta"].astype(f32)

    q_s = jnp.einsum("bqm,hmd->bhqd", Qr, wq) + bq[None, :, None, :]
    k_s = jnp.einsum("bkm,hmd->bhkd", Kr, wk) + bk[None, :, None, :]
    v_s = jnp.einsum("bkm,hmd->bhkd", Vr, wv) + bv[None, :, None, :]

    scores = jnp.einsum("bhqd,bhkd->bhqk", q_s, k_s)
    scores = jnp.where(attn_mask[:, None, :, :], jnp.float32(-1e9), scores)
    attn = jax.nn.softmax(scores, axis=-1)
    ctx = jnp.einsum("bhqk,bhkd->bhqd", attn, v_s)

    out = jnp.einsum("bhqd,hdm->bqm", ctx, wo) + bo + Qr
    mean = jnp.mean(out, axis=-1, keepdims=True)
    var = jnp.mean((out - mean) ** 2, axis=-1, keepdims=True)
    out = (out - mean) * lax.rsqrt(var + eps) * gamma + beta
    return out, attn


if __name__ == "__main__":
    # Small shapes consistent with the module: H*d_v = d_model = 128 (lane-dense).
    B, L, d_model, n_heads, d_k, d_v = 2, 8, 128, 2, 64, 64

    key = jax.random.PRNGKey(0)
    keys = jax.random.split(key, 12)
    Q = jax.random.normal(keys[0], (B, L, d_model), dtype=jnp.float32)
    K = jax.random.normal(keys[1], (B, L, d_model), dtype=jnp.float32)
    V = jax.random.normal(keys[2], (B, L, d_model), dtype=jnp.float32)
    attn_mask = jax.random.bernoulli(keys[3], p=0.25, shape=(B, L, L))
    attn_mask = attn_mask.at[..., 0].set(False)   # keep at least one key per query

    params = {
        "w_q": jax.random.normal(keys[4], (n_heads, d_model, d_k)) / math.sqrt(d_model),
        "b_q": 0.1 * jax.random.normal(keys[5], (n_heads, d_k)),
        "w_k": jax.random.normal(keys[6], (n_heads, d_model, d_k)) / math.sqrt(d_model),
        "b_k": 0.1 * jax.random.normal(keys[7], (n_heads, d_k)),
        "w_v": jax.random.normal(keys[8], (n_heads, d_model, d_v)) / math.sqrt(d_model),
        "b_v": 0.1 * jax.random.normal(keys[9], (n_heads, d_v)),
        "w_o": jax.random.normal(keys[10], (n_heads, d_v, d_model)) / math.sqrt(n_heads * d_v),
        "b_o": 0.1 * jax.random.normal(keys[11], (d_model,)),
        "gamma": jnp.ones((d_model,), jnp.float32),
        "beta": jnp.zeros((d_model,), jnp.float32),
    }

    out, attn = multi_head_attention(Q, K, V, attn_mask, params,
                                     n_heads=n_heads, d_k=d_k, d_v=d_v)
    jax.block_until_ready((out, attn))

    out_ref, attn_ref = _reference_mha(Q, K, V, attn_mask, params,
                                       n_heads=n_heads, d_k=d_k, d_v=d_v)
    # bf16 matmul inputs (f32 accumulation) vs f32 reference -> loose-ish tolerances.
    err_out = float(jnp.max(jnp.abs(out - out_ref)))
    err_attn = float(jnp.max(jnp.abs(attn - attn_ref)))
    assert err_out < 5e-2, f"output mismatch: max abs err {err_out}"
    assert err_attn < 2e-2, f"attn mismatch: max abs err {err_attn}"

    print("KERNEL_OK")
</pallas_src>

<mosaic_0001>
module attributes {stable_mosaic.version = 11 : i64} {
  func.func @_mha_kernel(%arg0: i32, %arg1: memref<1x8x128xbf16, #tpu.memory_space<vmem>>, %arg2: memref<1x8x128xbf16, #tpu.memory_space<vmem>>, %arg3: memref<1x8x128xbf16, #tpu.memory_space<vmem>>, %arg4: memref<1x8x8xi8, #tpu.memory_space<vmem>>, %arg5: memref<2x128x64xbf16, #tpu.memory_space<vmem>>, %arg6: memref<2x1x64xf32, #tpu.memory_space<vmem>>, %arg7: memref<2x128x64xbf16, #tpu.memory_space<vmem>>, %arg8: memref<2x1x64xf32, #tpu.memory_space<vmem>>, %arg9: memref<2x128x64xbf16, #tpu.memory_space<vmem>>, %arg10: memref<2x1x64xf32, #tpu.memory_space<vmem>>, %arg11: memref<2x64x128xbf16, #tpu.memory_space<vmem>>, %arg12: memref<1x128xf32, #tpu.memory_space<vmem>>, %arg13: memref<1x128xf32, #tpu.memory_space<vmem>>, %arg14: memref<1x128xf32, #tpu.memory_space<vmem>>, %arg15: memref<1x8x128xf32, #tpu.memory_space<vmem>>, %arg16: memref<1x2x8x8xf32, #tpu.memory_space<vmem>>) attributes {dimension_semantics = [#tpu.dimension_semantics<parallel>], iteration_bounds = array<i64: 2>, scalar_prefetch = 0 : i64, scratch_operands = 0 : i64, tpu.core_type = #tpu.core_type<tc>, window_params = [{transform_indices = @transform_0, window_bounds = array<i64: 1, 8, 128>}, {transform_indices = @transform_1, window_bounds = array<i64: 1, 8, 128>}, {transform_indices = @transform_2, window_bounds = array<i64: 1, 8, 128>}, {transform_indices = @transform_3, window_bounds = array<i64: 1, 8, 8>}, {pipeline_mode = #tpu.pipeline_mode<synchronous>, transform_indices = @transform_4, window_bounds = array<i64: 2, 128, 64>}, {pipeline_mode = #tpu.pipeline_mode<synchronous>, transform_indices = @transform_5, window_bounds = array<i64: 2, 1, 64>}, {pipeline_mode = #tpu.pipeline_mode<synchronous>, transform_indices = @transform_6, window_bounds = array<i64: 2, 128, 64>}, {pipeline_mode = #tpu.pipeline_mode<synchronous>, transform_indices = @transform_7, window_bounds = array<i64: 2, 1, 64>}, {pipeline_mode = #tpu.pipeline_mode<synchronous>, transform_indices = @transform_8, window_bounds = array<i64: 2, 128, 64>}, {pipeline_mode = #tpu.pipeline_mode<synchronous>, transform_indices = @transform_9, window_bounds = array<i64: 2, 1, 64>}, {pipeline_mode = #tpu.pipeline_mode<synchronous>, transform_indices = @transform_10, window_bounds = array<i64: 2, 64, 128>}, {pipeline_mode = #tpu.pipeline_mode<synchronous>, transform_indices = @transform_11, window_bounds = array<i64: 1, 128>}, {pipeline_mode = #tpu.pipeline_mode<synchronous>, transform_indices = @transform_12, window_bounds = array<i64: 1, 128>}, {pipeline_mode = #tpu.pipeline_mode<synchronous>, transform_indices = @transform_13, window_bounds = array<i64: 1, 128>}, {transform_indices = @transform_14, window_bounds = array<i64: 1, 8, 128>}, {transform_indices = @transform_15, window_bounds = array<i64: 1, 2, 8, 8>}]} {
    %c0 = arith.constant 0 : index
    %c0_0 = arith.constant 0 : index
    %c0_1 = arith.constant 0 : index
    %0 = vector.load %arg1[%c0, %c0_0, %c0_1] : memref<1x8x128xbf16, #tpu.memory_space<vmem>>, vector<1x8x128xbf16>
    %1 = vector.shape_cast %0 : vector<1x8x128xbf16> to vector<8x128xbf16>
    %c0_2 = arith.constant 0 : index
    %c0_3 = arith.constant 0 : index
    %c0_4 = arith.constant 0 : index
    %2 = vector.load %arg2[%c0_2, %c0_3, %c0_4] : memref<1x8x128xbf16, #tpu.memory_space<vmem>>, vector<1x8x128xbf16>
    %3 = vector.shape_cast %2 : vector<1x8x128xbf16> to vector<8x128xbf16>
    %c0_5 = arith.constant 0 : index
    %c0_6 = arith.constant 0 : index
    %c0_7 = arith.constant 0 : index
    %4 = vector.load %arg3[%c0_5, %c0_6, %c0_7] : memref<1x8x128xbf16, #tpu.memory_space<vmem>>, vector<1x8x128xbf16>
    %5 = vector.shape_cast %4 : vector<1x8x128xbf16> to vector<8x128xbf16>
    %c0_8 = arith.constant 0 : index
    %c0_9 = arith.constant 0 : index
    %c0_10 = arith.constant 0 : index
    %6 = vector.load %arg4[%c0_8, %c0_9, %c0_10] : memref<1x8x8xi8, #tpu.memory_space<vmem>>, vector<1x8x8xi8>
    %7 = vector.shape_cast %6 : vector<1x8x8xi8> to vector<8x8xi8>
    %8 = arith.extsi %7 : vector<8x8xi8> to vector<8x8xi32>
    %c0_i32 = arith.constant 0 : i32
    %9 = vector.broadcast %c0_i32 : i32 to vector<8x8xi32>
    %10 = arith.cmpi ne, %8, %9 : vector<8x8xi32>
    %c0_11 = arith.constant 0 : index
    %c0_12 = arith.constant 0 : index
    %c0_13 = arith.constant 0 : index
    %11 = vector.load %arg5[%c0_11, %c0_12, %c0_13] : memref<2x128x64xbf16, #tpu.memory_space<vmem>>, vector<1x128x64xbf16>
    %12 = vector.shape_cast %11 : vector<1x128x64xbf16> to vector<128x64xbf16>
    %cst = arith.constant dense<0.000000e+00> : vector<8x64xf32>
    %13 = tpu.matmul %1, %12, %cst {dimension_numbers = #tpu.dot_dimension_numbers<[1], [0], [0], [1], [0, 0, 1, 1], [], []>} : vector<8x128xbf16>, vector<128x64xbf16>, vector<8x64xf32> -> vector<8x64xf32>
    %c0_14 = arith.constant 0 : index
    %c0_15 = arith.constant 0 : index
    %c0_16 = arith.constant 0 : index
    %14 = vector.load %arg6[%c0_14, %c0_15, %c0_16] : memref<2x1x64xf32, #tpu.memory_space<vmem>>, vector<1x1x64xf32>
    %15 = vector.shape_cast %14 : vector<1x1x64xf32> to vector<1x64xf32>
    %16 = vector.broadcast %15 : vector<1x64xf32> to vector<8x64xf32>
    %17 = arith.addf %13, %16 : vector<8x64xf32>
    %c0_17 = arith.constant 0 : index
    %c0_18 = arith.constant 0 : index
    %c0_19 = arith.constant 0 : index
    %18 = vector.load %arg7[%c0_17, %c0_18, %c0_19] : memref<2x128x64xbf16, #tpu.memory_space<vmem>>, vector<1x128x64xbf16>
    %19 = vector.shape_cast %18 : vector<1x128x64xbf16> to vector<128x64xbf16>
    %cst_20 = arith.constant dense<0.000000e+00> : vector<8x64xf32>
    %20 = tpu.matmul %3, %19, %cst_20 {dimension_numbers = #tpu.dot_dimension_numbers<[1], [0], [0], [1], [0, 0, 1, 1], [], []>} : vector<8x128xbf16>, vector<128x64xbf16>, vector<8x64xf32> -> vector<8x64xf32>
    %c0_21 = arith.constant 0 : index
    %c0_22 = arith.constant 0 : index
    %c0_23 = arith.constant 0 : index
    %21 = vector.load %arg8[%c0_21, %c0_22, %c0_23] : memref<2x1x64xf32, #tpu.memory_space<vmem>>, vector<1x1x64xf32>
    %22 = vector.shape_cast %21 : vector<1x1x64xf32> to vector<1x64xf32>
    %23 = vector.broadcast %22 : vector<1x64xf32> to vector<8x64xf32>
    %24 = arith.addf %20, %23 : vector<8x64xf32>
    %c0_24 = arith.constant 0 : index
    %c0_25 = arith.constant 0 : index
    %c0_26 = arith.constant 0 : index
    %25 = vector.load %arg9[%c0_24, %c0_25, %c0_26] : memref<2x128x64xbf16, #tpu.memory_space<vmem>>, vector<1x128x64xbf16>
    %26 = vector.shape_cast %25 : vector<1x128x64xbf16> to vector<128x64xbf16>
    %cst_27 = arith.constant dense<0.000000e+00> : vector<8x64xf32>
    %27 = tpu.matmul %5, %26, %cst_27 {dimension_numbers = #tpu.dot_dimension_numbers<[1], [0], [0], [1], [0, 0, 1, 1], [], []>} : vector<8x128xbf16>, vector<128x64xbf16>, vector<8x64xf32> -> vector<8x64xf32>
    %c0_28 = arith.constant 0 : index
    %c0_29 = arith.constant 0 : index
    %c0_30 = arith.constant 0 : index
    %28 = vector.load %arg10[%c0_28, %c0_29, %c0_30] : memref<2x1x64xf32, #tpu.memory_space<vmem>>, vector<1x1x64xf32>
    %29 = vector.shape_cast %28 : vector<1x1x64xf32> to vector<1x64xf32>
    %30 = vector.broadcast %29 : vector<1x64xf32> to vector<8x64xf32>
    %31 = arith.addf %27, %30 : vector<8x64xf32>
    %32 = arith.truncf %17 : vector<8x64xf32> to vector<8x64xbf16>
    %33 = arith.truncf %24 : vector<8x64xf32> to vector<8x64xbf16>
    %cst_31 = arith.constant dense<0.000000e+00> : vector<8x8xf32>
    %34 = tpu.matmul %32, %33, %cst_31 {dimension_numbers = #tpu.dot_dimension_numbers<[1], [1], [0], [0], [0, 0, 1, 0], [], []>} : vector<8x64xbf16>, vector<8x64xbf16>, vector<8x8xf32> -> vector<8x8xf32>
    %cst_32 = arith.constant -1.000000e+09 : f32
    %35 = vector.broadcast %cst_32 : f32 to vector<8x8xf32>
    %36 = arith.select %10, %35, %34 : vector<8x8xi1>, vector<8x8xf32>
    %cst_33 = arith.constant dense<0xFF800000> : vector<8xf32>
    %37 = vector.multi_reduction <maximumf>, %36, %cst_33 [1] : vector<8x8xf32> to vector<8xf32>
    %38 = vector.shape_cast %37 : vector<8xf32> to vector<8x1xf32>
    %39 = vector.broadcast %38 : vector<8x1xf32> to vector<8x8xf32>
    %40 = arith.subf %36, %39 : vector<8x8xf32>
    %41 = math.exp %40 : vector<8x8xf32>
    %cst_34 = arith.constant dense<0.000000e+00> : vector<8xf32>
    %42 = vector.multi_reduction <add>, %41, %cst_34 [1] : vector<8x8xf32> to vector<8xf32>
    %43 = vector.shape_cast %42 : vector<8xf32> to vector<8x1xf32>
    %44 = tpu.reciprocal %43 {approx = true} : vector<8x1xf32> -> vector<8x1xf32>
    %45 = vector.broadcast %44 : vector<8x1xf32> to vector<8x8xf32>
    %46 = arith.mulf %41, %45 : vector<8x8xf32>
    %c0_35 = arith.constant 0 : index
    %c0_36 = arith.constant 0 : index
    %c0_37 = arith.constant 0 : index
    %c0_38 = arith.constant 0 : index
    %47 = vector.load %arg16[%c0_35, %c0_36, %c0_37, %c0_38] : memref<1x2x8x8xf32, #tpu.memory_space<vmem>>, vector<1x1x8x8xf32>
    %48 = vector.shape_cast %47 : vector<1x1x8x8xf32> to vector<8x8xf32>
    %49 = vector.shape_cast %46 : vector<8x8xf32> to vector<1x1x8x8xf32>
    tpu.vector_store %arg16[%c0_35, %c0_36, %c0_37, %c0_38], %49 {strides = array<i32>} : memref<1x2x8x8xf32, #tpu.memory_space<vmem>>, vector<1x1x8x8xf32>,
    %50 = arith.truncf %46 : vector<8x8xf32> to vector<8x8xbf16>
    %51 = arith.truncf %31 : vector<8x64xf32> to vector<8x64xbf16>
    %cst_39 = arith.constant dense<0.000000e+00> : vector<8x64xf32>
    %52 = tpu.matmul %50, %51, %cst_39 {dimension_numbers = #tpu.dot_dimension_numbers<[1], [0], [0], [1], [0, 0, 1, 1], [], []>} : vector<8x8xbf16>, vector<8x64xbf16>, vector<8x64xf32> -> vector<8x64xf32>
    %53 = arith.truncf %52 : vector<8x64xf32> to vector<8x64xbf16>
    %c0_40 = arith.constant 0 : index
    %c0_41 = arith.constant 0 : index
    %c0_42 = arith.constant 0 : index
    %54 = vector.load %arg11[%c0_40, %c0_41, %c0_42] : memref<2x64x128xbf16, #tpu.memory_space<vmem>>, vector<1x64x128xbf16>
    %55 = vector.shape_cast %54 : vector<1x64x128xbf16> to vector<64x128xbf16>
    %cst_43 = arith.constant dense<0.000000e+00> : vector<8x128xf32>
    %56 = tpu.matmul %53, %55, %cst_43 {dimension_numbers = #tpu.dot_dimension_numbers<[1], [0], [0], [1], [0, 0, 1, 1], [], []>} : vector<8x64xbf16>, vector<64x128xbf16>, vector<8x128xf32> -> vector<8x128xf32>
    %c1 = arith.constant 1 : index
    %c0_44 = arith.constant 0 : index
    %c0_45 = arith.constant 0 : index
    %57 = vector.load %arg5[%c1, %c0_44, %c0_45] : memref<2x128x64xbf16, #tpu.memory_space<vmem>>, vector<1x128x64xbf16>
    %58 = vector.shape_cast %57 : vector<1x128x64xbf16> to vector<128x64xbf16>
    %cst_46 = arith.constant dense<0.000000e+00> : vector<8x64xf32>
    %59 = tpu.matmul %1, %58, %cst_46 {dimension_numbers = #tpu.dot_dimension_numbers<[1], [0], [0], [1], [0, 0, 1, 1], [], []>} : vector<8x128xbf16>, vector<128x64xbf16>, vector<8x64xf32> -> vector<8x64xf32>
    %c1_47 = arith.constant 1 : index
    %c0_48 = arith.constant 0 : index
    %c0_49 = arith.constant 0 : index
    %60 = vector.load %arg6[%c1_47, %c0_48, %c0_49] : memref<2x1x64xf32, #tpu.memory_space<vmem>>, vector<1x1x64xf32>
    %61 = vector.shape_cast %60 : vector<1x1x64xf32> to vector<1x64xf32>
    %62 = vector.broadcast %61 : vector<1x64xf32> to vector<8x64xf32>
    %63 = arith.addf %59, %62 : vector<8x64xf32>
    %c1_50 = arith.constant 1 : index
    %c0_51 = arith.constant 0 : index
    %c0_52 = arith.constant 0 : index
    %64 = vector.load %arg7[%c1_50, %c0_51, %c0_52] : memref<2x128x64xbf16, #tpu.memory_space<vmem>>, vector<1x128x64xbf16>
    %65 = vector.shape_cast %64 : vector<1x128x64xbf16> to vector<128x64xbf16>
    %cst_53 = arith.constant dense<0.000000e+00> : vector<8x64xf32>
    %66 = tpu.matmul %3, %65, %cst_53 {dimension_numbers = #tpu.dot_dimension_numbers<[1], [0], [0], [1], [0, 0, 1, 1], [], []>} : vector<8x128xbf16>, vector<128x64xbf16>, vector<8x64xf32> -> vector<8x64xf32>
    %c1_54 = arith.constant 1 : index
    %c0_55 = arith.constant 0 : index
    %c0_56 = arith.constant 0 : index
    %67 = vector.load %arg8[%c1_54, %c0_55, %c0_56] : memref<2x1x64xf32, #tpu.memory_space<vmem>>, vector<1x1x64xf32>
    %68 = vector.shape_cast %67 : vector<1x1x64xf32> to vector<1x64xf32>
    %69 = vector.broadcast %68 : vector<1x64xf32> to vector<8x64xf32>
    %70 = arith.addf %66, %69 : vector<8x64xf32>
    %c1_57 = arith.constant 1 : index
    %c0_58 = arith.constant 0 : index
    %c0_59 = arith.constant 0 : index
    %71 = vector.load %arg9[%c1_57, %c0_58, %c0_59] : memref<2x128x64xbf16, #tpu.memory_space<vmem>>, vector<1x128x64xbf16>
    %72 = vector.shape_cast %71 : vector<1x128x64xbf16> to vector<128x64xbf16>
    %cst_60 = arith.constant dense<0.000000e+00> : vector<8x64xf32>
    %73 = tpu.matmul %5, %72, %cst_60 {dimension_numbers = #tpu.dot_dimension_numbers<[1], [0], [0], [1], [0, 0, 1, 1], [], []>} : vector<8x128xbf16>, vector<128x64xbf16>, vector<8x64xf32> -> vector<8x64xf32>
    %c1_61 = arith.constant 1 : index
    %c0_62 = arith.constant 0 : index
    %c0_63 = arith.constant 0 : index
    %74 = vector.load %arg10[%c1_61, %c0_62, %c0_63] : memref<2x1x64xf32, #tpu.memory_space<vmem>>, vector<1x1x64xf32>
    %75 = vector.shape_cast %74 : vector<1x1x64xf32> to vector<1x64xf32>
    %76 = vector.broadcast %75 : vector<1x64xf32> to vector<8x64xf32>
    %77 = arith.addf %73, %76 : vector<8x64xf32>
    %78 = arith.truncf %63 : vector<8x64xf32> to vector<8x64xbf16>
    %79 = arith.truncf %70 : vector<8x64xf32> to vector<8x64xbf16>
    %cst_64 = arith.constant dense<0.000000e+00> : vector<8x8xf32>
    %80 = tpu.matmul %78, %79, %cst_64 {dimension_numbers = #tpu.dot_dimension_numbers<[1], [1], [0], [0], [0, 0, 1, 0], [], []>} : vector<8x64xbf16>, vector<8x64xbf16>, vector<8x8xf32> -> vector<8x8xf32>
    %cst_65 = arith.constant -1.000000e+09 : f32
    %81 = vector.broadcast %cst_65 : f32 to vector<8x8xf32>
    %82 = arith.select %10, %81, %80 : vector<8x8xi1>, vector<8x8xf32>
    %cst_66 = arith.constant dense<0xFF800000> : vector<8xf32>
    %83 = vector.multi_reduction <maximumf>, %82, %cst_66 [1] : vector<8x8xf32> to vector<8xf32>
    %84 = vector.shape_cast %83 : vector<8xf32> to vector<8x1xf32>
    %85 = vector.broadcast %84 : vector<8x1xf32> to vector<8x8xf32>
    %86 = arith.subf %82, %85 : vector<8x8xf32>
    %87 = math.exp %86 : vector<8x8xf32>
    %cst_67 = arith.constant dense<0.000000e+00> : vector<8xf32>
    %88 = vector.multi_reduction <add>, %87, %cst_67 [1] : vector<8x8xf32> to vector<8xf32>
    %89 = vector.shape_cast %88 : vector<8xf32> to vector<8x1xf32>
    %90 = tpu.reciprocal %89 {approx = true} : vector<8x1xf32> -> vector<8x1xf32>
    %91 = vector.broadcast %90 : vector<8x1xf32> to vector<8x8xf32>
    %92 = arith.mulf %87, %91 : vector<8x8xf32>
    %c0_68 = arith.constant 0 : index
    %c1_69 = arith.constant 1 : index
    %c0_70 = arith.constant 0 : index
    %c0_71 = arith.constant 0 : index
    %93 = vector.load %arg16[%c0_68, %c1_69, %c0_70, %c0_71] : memref<1x2x8x8xf32, #tpu.memory_space<vmem>>, vector<1x1x8x8xf32>
    %94 = vector.shape_cast %93 : vector<1x1x8x8xf32> to vector<8x8xf32>
    %95 = vector.shape_cast %92 : vector<8x8xf32> to vector<1x1x8x8xf32>
    tpu.vector_store %arg16[%c0_68, %c1_69, %c0_70, %c0_71], %95 {strides = array<i32>} : memref<1x2x8x8xf32, #tpu.memory_space<vmem>>, vector<1x1x8x8xf32>,
    %96 = arith.truncf %92 : vector<8x8xf32> to vector<8x8xbf16>
    %97 = arith.truncf %77 : vector<8x64xf32> to vector<8x64xbf16>
    %cst_72 = arith.constant dense<0.000000e+00> : vector<8x64xf32>
    %98 = tpu.matmul %96, %97, %cst_72 {dimension_numbers = #tpu.dot_dimension_numbers<[1], [0], [0], [1], [0, 0, 1, 1], [], []>} : vector<8x8xbf16>, vector<8x64xbf16>, vector<8x64xf32> -> vector<8x64xf32>
    %99 = arith.truncf %98 : vector<8x64xf32> to vector<8x64xbf16>
    %c1_73 = arith.constant 1 : index
    %c0_74 = arith.constant 0 : index
    %c0_75 = arith.constant 0 : index
    %100 = vector.load %arg11[%c1_73, %c0_74, %c0_75] : memref<2x64x128xbf16, #tpu.memory_space<vmem>>, vector<1x64x128xbf16>
    %101 = vector.shape_cast %100 : vector<1x64x128xbf16> to vector<64x128xbf16>
    %cst_76 = arith.constant dense<0.000000e+00> : vector<8x128xf32>
    %102 = tpu.matmul %99, %101, %cst_76 {dimension_numbers = #tpu.dot_dimension_numbers<[1], [0], [0], [1], [0, 0, 1, 1], [], []>} : vector<8x64xbf16>, vector<64x128xbf16>, vector<8x128xf32> -> vector<8x128xf32>
    %103 = arith.addf %56, %102 : vector<8x128xf32>
    %c0_77 = arith.constant 0 : index
    %c0_78 = arith.constant 0 : index
    %104 = vector.load %arg12[%c0_77, %c0_78] : memref<1x128xf32, #tpu.memory_space<vmem>>, vector<1x128xf32>
    %105 = vector.broadcast %104 : vector<1x128xf32> to vector<8x128xf32>
    %106 = arith.addf %103, %105 : vector<8x128xf32>
    %107 = arith.extf %1 : vector<8x128xbf16> to vector<8x128xf32>
    %108 = arith.addf %106, %107 : vector<8x128xf32>
    %cst_79 = arith.constant dense<0.000000e+00> : vector<8xf32>
    %109 = vector.multi_reduction <add>, %108, %cst_79 [1] : vector<8x128xf32> to vector<8xf32>
    %110 = vector.shape_cast %109 : vector<8xf32> to vector<8x1xf32>
    %cst_80 = arith.constant 1.280000e+02 : f32
    %111 = vector.broadcast %cst_80 : f32 to vector<8x1xf32>
    %112 = arith.divf %110, %111 : vector<8x1xf32>
    %113 = vector.broadcast %112 : vector<8x1xf32> to vector<8x128xf32>
    %114 = arith.subf %108, %113 : vector<8x128xf32>
    %115 = arith.mulf %114, %114 : vector<8x128xf32>
    %cst_81 = arith.constant dense<0.000000e+00> : vector<8xf32>
    %116 = vector.multi_reduction <add>, %115, %cst_81 [1] : vector<8x128xf32> to vector<8xf32>
    %117 = vector.shape_cast %116 : vector<8xf32> to vector<8x1xf32>
    %cst_82 = arith.constant 1.280000e+02 : f32
    %118 = vector.broadcast %cst_82 : f32 to vector<8x1xf32>
    %119 = arith.divf %117, %118 : vector<8x1xf32>
    %cst_83 = arith.constant 9.99999974E-6 : f32
    %120 = vector.broadcast %cst_83 : f32 to vector<8x1xf32>
    %121 = arith.addf %119, %120 : vector<8x1xf32>
    %122 = math.rsqrt %121 : vector<8x1xf32>
    %123 = vector.broadcast %122 : vector<8x1xf32> to vector<8x128xf32>
    %124 = arith.mulf %114, %123 : vector<8x128xf32>
    %c0_84 = arith.constant 0 : index
    %c0_85 = arith.constant 0 : index
    %125 = vector.load %arg13[%c0_84, %c0_85] : memref<1x128xf32, #tpu.memory_space<vmem>>, vector<1x128xf32>
    %126 = vector.broadcast %125 : vector<1x128xf32> to vector<8x128xf32>
    %127 = arith.mulf %124, %126 : vector<8x128xf32>
    %c0_86 = arith.constant 0 : index
    %c0_87 = arith.constant 0 : index
    %128 = vector.load %arg14[%c0_86, %c0_87] : memref<1x128xf32, #tpu.memory_space<vmem>>, vector<1x128xf32>
    %129 = vector.broadcast %128 : vector<1x128xf32> to vector<8x128xf32>
    %130 = arith.addf %127, %129 : vector<8x128xf32>
    %c0_88 = arith.constant 0 : index
    %c0_89 = arith.constant 0 : index
    %c0_90 = arith.constant 0 : index
    %131 = vector.load %arg15[%c0_88, %c0_89, %c0_90] : memref<1x8x128xf32, #tpu.memory_space<vmem>>, vector<1x8x128xf32>
    %132 = vector.shape_cast %131 : vector<1x8x128xf32> to vector<8x128xf32>
    %133 = vector.shape_cast %130 : vector<8x128xf32> to vector<1x8x128xf32>
    tpu.vector_store %arg15[%c0_88, %c0_89, %c0_90], %133 {strides = array<i32>} : memref<1x8x128xf32, #tpu.memory_space<vmem>>, vector<1x8x128xf32>,
    return
  }
  func.func @transform_0(%arg0: i32) -> (i32, i32, i32) {
    %c0_i32 = arith.constant 0 : i32
    %c0_i32_0 = arith.constant 0 : i32
    %c0_i32_1 = arith.constant 0 : i32
    return %arg0, %c0_i32, %c0_i32_0 : i32, i32, i32
  }
  func.func @transform_1(%arg0: i32) -> (i32, i32, i32) {
    %c0_i32 = arith.constant 0 : i32
    %c0_i32_0 = arith.constant 0 : i32
    %c0_i32_1 = arith.constant 0 : i32
    return %arg0, %c0_i32, %c0_i32_0 : i32, i32, i32
  }
  func.func @transform_2(%arg0: i32) -> (i32, i32, i32) {
    %c0_i32 = arith.constant 0 : i32
    %c0_i32_0 = arith.constant 0 : i32
    %c0_i32_1 = arith.constant 0 : i32
    return %arg0, %c0_i32, %c0_i32_0 : i32, i32, i32
  }
  func.func @transform_3(%arg0: i32) -> (i32, i32, i32) {
    %c0_i32 = arith.constant 0 : i32
    %c0_i32_0 = arith.constant 0 : i32
    %c0_i32_1 = arith.constant 0 : i32
    return %arg0, %c0_i32, %c0_i32_0 : i32, i32, i32
  }
  func.func @transform_4(%arg0: i32) -> (i32, i32, i32) {
    %c0_i32 = arith.constant 0 : i32
    %c0_i32_0 = arith.constant 0 : i32
    %c0_i32_1 = arith.constant 0 : i32
    %c0_i32_2 = arith.constant 0 : i32
    return %c0_i32, %c0_i32_0, %c0_i32_1 : i32, i32, i32
  }
  func.func @transform_5(%arg0: i32) -> (i32, i32, i32) {
    %c0_i32 = arith.constant 0 : i32
    %c0_i32_0 = arith.constant 0 : i32
    %c0_i32_1 = arith.constant 0 : i32
    %c0_i32_2 = arith.constant 0 : i32
    return %c0_i32, %c0_i32_0, %c0_i32_1 : i32, i32, i32
  }
  func.func @transform_6(%arg0: i32) -> (i32, i32, i32) {
    %c0_i32 = arith.constant 0 : i32
    %c0_i32_0 = arith.constant 0 : i32
    %c0_i32_1 = arith.constant 0 : i32
    %c0_i32_2 = arith.constant 0 : i32
    return %c0_i32, %c0_i32_0, %c0_i32_1 : i32, i32, i32
  }
  func.func @transform_7(%arg0: i32) -> (i32, i32, i32) {
    %c0_i32 = arith.constant 0 : i32
    %c0_i32_0 = arith.constant 0 : i32
    %c0_i32_1 = arith.constant 0 : i32
    %c0_i32_2 = arith.constant 0 : i32
    return %c0_i32, %c0_i32_0, %c0_i32_1 : i32, i32, i32
  }
  func.func @transform_8(%arg0: i32) -> (i32, i32, i32) {
    %c0_i32 = arith.constant 0 : i32
    %c0_i32_0 = arith.constant 0 : i32
    %c0_i32_1 = arith.constant 0 : i32
    %c0_i32_2 = arith.constant 0 : i32
    return %c0_i32, %c0_i32_0, %c0_i32_1 : i32, i32, i32
  }
  func.func @transform_9(%arg0: i32) -> (i32, i32, i32) {
    %c0_i32 = arith.constant 0 : i32
    %c0_i32_0 = arith.constant 0 : i32
    %c0_i32_1 = arith.constant 0 : i32
    %c0_i32_2 = arith.constant 0 : i32
    return %c0_i32, %c0_i32_0, %c0_i32_1 : i32, i32, i32
  }
  func.func @transform_10(%arg0: i32) -> (i32, i32, i32) {
    %c0_i32 = arith.constant 0 : i32
    %c0_i32_0 = arith.constant 0 : i32
    %c0_i32_1 = arith.constant 0 : i32
    %c0_i32_2 = arith.constant 0 : i32
    return %c0_i32, %c0_i32_0, %c0_i32_1 : i32, i32, i32
  }
  func.func @transform_11(%arg0: i32) -> (i32, i32) {
    %c0_i32 = arith.constant 0 : i32
    %c0_i32_0 = arith.constant 0 : i32
    %c0_i32_1 = arith.constant 0 : i32
    return %c0_i32, %c0_i32_0 : i32, i32
  }
  func.func @transform_12(%arg0: i32) -> (i32, i32) {
    %c0_i32 = arith.constant 0 : i32
    %c0_i32_0 = arith.constant 0 : i32
    %c0_i32_1 = arith.constant 0 : i32
    return %c0_i32, %c0_i32_0 : i32, i32
  }
  func.func @transform_13(%arg0: i32) -> (i32, i32) {
    %c0_i32 = arith.constant 0 : i32
    %c0_i32_0 = arith.constant 0 : i32
    %c0_i32_1 = arith.constant 0 : i32
    return %c0_i32, %c0_i32_0 : i32, i32
  }
  func.func @transform_14(%arg0: i32) -> (i32, i32, i32) {
    %c0_i32 = arith.constant 0 : i32
    %c0_i32_0 = arith.constant 0 : i32
    %c0_i32_1 = arith.constant 0 : i32
    return %arg0, %c0_i32, %c0_i32_0 : i32, i32, i32
  }
  func.func @transform_15(%arg0: i32) -> (i32, i32, i32, i32) {
    %c0_i32 = arith.constant 0 : i32
    %c0_i32_0 = arith.constant 0 : i32
    %c0_i32_1 = arith.constant 0 : i32
    %c0_i32_2 = arith.constant 0 : i32
    return %arg0, %c0_i32, %c0_i32_0, %c0_i32_1 : i32, i32, i32, i32
  }
}

</mosaic_0001>

<bundles_post_ra>
// kernel: tpu_custom_call.1
= control target key start
LH: loop header
LB: loop body
LE: loop exit
PB: predicated region body
PF: predicated region fallthrough
CT: control target
= control target key end

     0   :  { %s2950_s0 = inlined_call_operand.vmem [shape: bf16[2,8,128], index: 0, kind: input, shape index: {}]   ;;  %s2951_s1 = inlined_call_operand.vmem [shape: bf16[2,8,128], index: 1, kind: input, shape index: {}]   ;;  %s2952_s2 = inlined_call_operand.vmem [shape: bf16[2,8,128], index: 2, kind: input, shape index: {}]   ;;  %s2953_s3 = inlined_call_operand.vmem [shape: s8[2,8,8], index: 3, kind: input, shape index: {}]   ;;  %s2954_s4 = inlined_call_operand.vmem [shape: bf16[2,128,64], index: 4, kind: input, shape index: {}]   ;;  %s2955_s5 = inlined_call_operand.vmem [shape: f32[2,1,64], index: 5, kind: input, shape index: {}]   ;;  %s2956_s6 = inlined_call_operand.vmem [shape: bf16[2,128,64], index: 6, kind: input, shape index: {}]   ;;  %s2957_s7 = inlined_call_operand.vmem [shape: f32[2,1,64], index: 7, kind: input, shape index: {}]   ;;  %s2958_s8 = inlined_call_operand.vmem [shape: bf16[2,128,64], index: 8, kind: input, shape index: {}]   ;;  %s2959_s9 = inlined_call_operand.vmem [shape: f32[2,1,64], index: 9, kind: input, shape index: {}]   ;;  %s2960_s10 = inlined_call_operand.vmem [shape: bf16[2,64,128], index: 10, kind: input, shape index: {}]   ;;  %s2961_s11 = inlined_call_operand.vmem [shape: f32[1,128], index: 11, kind: input, shape index: {}]   ;;  %s2962_s12 = inlined_call_operand.vmem [shape: f32[1,128], index: 12, kind: input, shape index: {}]   ;;  %s2963_s13 = inlined_call_operand.vmem [shape: f32[1,128], index: 13, kind: input, shape index: {}]   ;;  %s2964_s14 = inlined_call_operand.hbm [shape: f32[2,8,128], index: 14, kind: output, shape index: {0}]   ;;  %s2965_s15 = inlined_call_operand.hbm [shape: f32[2,2,8,8], index: 15, kind: output, shape index: {1}]  }
   0x1   :  { %2972 = sst [smem:[#allocation14_spill]] %s2950_s0 }
   0x2   :  { %2973 = sst [smem:[#allocation15_spill]] %s2951_s1 }
   0x3   :  { %21 = vsyncpa [#allocation3], 0 }
   0x4   :  { %23 = vsyncpa [#allocation3 + $0x1], 0 }
   0x5   :  { %24 = vsyncpa [#allocation5], 0 }
   0x6   :  { %26 = vsyncpa [#allocation5 + $0x1], 0  ;;  %s2488_s18 = smov 0   ;;  %s2490_s19 = smov 0  }
   0x7   :  { %s2492_s20 = smov 0   ;;  %s2494_s21 = smov 0  }
   0x8 LB: > { %2974 = sst [smem:[#allocation8_spill]] %s2388_s18  ;;  %s2509_s22 = sadd.s32 4294967295, %s2400_s21   ;;  %s2400_s21 = sphi %s2494_s21, %s2990_s21   ;;  %s2396_s20 = sphi %s2492_s20, %s2992_s20   ;;  %s2392_s19 = sphi %s2490_s19, %s2994_s19   ;;  %s2388_s18 = sphi %s2488_s18, %s2993_s18  }
   0x9   : > { %2975 = sst [smem:[#allocation9_spill]] %s2396_s20  ;;  %s1807_s23 = sadd.s32 4294967294, %s2400_s21  }
   0xa   : > { %2976 = sst [smem:[#allocation10_spill]] %s2400_s21  ;;  %s2513_s24 = sadd.s32 1, %s2400_s21  }
   0xb   : > { %2977 = sst [smem:[#allocation11_spill]] %s2513_s24  ;;  %s353_s25 = sadd.s32 1, %s2396_s20 }
   0xc   : > { %s350_s26 = ssub.s32 %s2400_s21, %s2513_s24  ;;  %p363_p0 = scmp.ne.s32.totalorder %s2396_s20, %s2392_s19 }
   0xd   : > { %p351_p1 = scmp.eq.s32.totalorder %s350_s26, 0  ;;  %p364_p2 = scmp.eq.s32.totalorder %s2509_s22, 1 }
   0xe   : > { %p369_p3 = scmp.ne.s32.totalorder %s2392_s19, %s2388_s18  ;;  %p370_p4 = scmp.eq.s32.totalorder %s1807_s23, 1 }
   0xf   : > { %s2524_s27 = scalar_select %p351_p1, %s2396_s20, %s353_s25  }
  0x10   : > { %p2526_p5 = por %p364_p2, %p363_p0  ;;  %p2530_p6 = por %p370_p4, %p369_p3 }
  0x11   : > { %2978 = sst [smem:[#allocation12_spill]] %s2524_s27  ;;  %p1810_p7 = scmp.ge.s32.totalorder %s2400_s21, 1 }
  0x12   : > { %s2980_s29 = scalar_select %p2530_p6, 1, 0 }
  0x13   : > { %p472_p8 = scmp.lt.s32.totalorder %s2400_s21, 3 }
  0x14   : > { %2981 = sst [smem:[#allocation13_spill]] %s2980_s29 }
  0x15   : > { %p473_p9 = pnand %p1810_p7, %p472_p8 }
  0x16   : > { %p536_p10 = scmp.lt.s32.totalorder (!%p473_p9), %s2509_s22, 1  ;;  %s2982_s1 = sld [smem:[#allocation15_spill]] (!%p473_p9) }
  0x17   : > { %476 = sbr.rel (%p473_p9) target bundleno = 2224 (0x8b0), region = 76  ;;  %s2983_s0 = sld [smem:[#allocation14_spill]] (!%p473_p9) }
  0x18   : > { %s2736_s24 = sand.u32 (!%p473_p9), 1, %s2392_s19   ;;  %s1955_s30 = sshll.u32 (!%p473_p9), %s2509_s22, 8 }
  0x1c   : > { %v2244_v0 = vld [vmem:[%s2956_s6 + $0x38] sm:$0xff]   ;;  %v2402_v1 = vmov 0.0   ;;  %v2246_v3 = vld [vmem:[%s2956_s6 + $0x30] sm:$0xff]   ;;  %vm2403_vm0 = vmmov 0   ;;  %v2248_v5 = vld [vmem:[%s2956_s6 + $0x28] sm:$0xff]   ;;  %s2574_s27 = scalar_select %p536_p10, %s2509_s22, 1 }
  0x1d   : > { %2048 = vmatprep.subr.bf16.mxu1 %v2402_v1  ;;  %2028 = vmatprep.subr.bf16.mxu0 %v2402_v1  ;;  %v2245_v2 = vld [vmem:[%s2954_s4 + $0x38] sm:$0xff]   ;;  %v2247_v4 = vld [vmem:[%s2954_s4 + $0x30] sm:$0xff]   ;;  %v2249_v6 = vld [vmem:[%s2954_s4 + $0x28] sm:$0xff]   ;;  %vm894_vm1 = vcmask 523264   ;;  %vm942_vm3 = vcmask 64512   ;;  %vm960_vm4 = vcmask 1043456  }
  0x1e   : > { %2049 = vmatpush3.bf16.msra.mxu1 %v2244_v0  ;;  %2064 = vmatprep.mubr.msk.bf16.mxu1 %vm2403_vm0, %v2402_v1  ;;  %v2250_v7 = vld [vmem:[%s2956_s6 + $0x20] sm:$0xff]   ;;  %v2252_v9 = vld [vmem:[%s2956_s6 + $0x18] sm:$0xff]   ;;  %v2254_v11 = vld [vmem:[%s2956_s6 + $0x10] sm:$0xff]   ;;  %s2588_s20 = sshll.u32 %s2574_s27, 2  ;;  %s1816_s29 = sshll.u32 %s2574_s27, 1 }
  0x1f   : > { %2029 = vmatpush3.bf16.msra.mxu0 %v2245_v2  ;;  %2050 = vmatprep.subr.bf16.mxu1 %v2402_v1  ;;  %v2251_v8 = vld [vmem:[%s2954_s4 + $0x20] sm:$0xff]   ;;  %v2253_v10 = vld [vmem:[%s2954_s4 + $0x18] sm:$0xff]   ;;  %v2255_v12 = vld [vmem:[%s2954_s4 + $0x10] sm:$0xff]   ;;  %s543_s18 = scalar_lea.vmem %s2982_s1, %s2588_s20  ;;  %s539_s21 = scalar_lea.vmem %s2983_s0, %s2588_s20 }
  0x20   : > { %2030 = vmatprep.subr.bf16.mxu0 %v2402_v1  ;;  %2044 = vmatprep.mubr.msk.bf16.mxu0 %vm2403_vm0, %v2402_v1  ;;  %v2256_v13 = vld [vmem:[%s2956_s6 + $0x8] sm:$0xff]   ;;  %v2258_v15 = vld [vmem:[%s2956_s6] sm:$0xff]   ;;  %v2260_v34 = vld [vmem:[%s2958_s8 + $0x38] sm:$0xff]   ;;  %s551_s25 = scalar_lea.vmem %s2953_s3, %s1816_s29  ;;  %s2882_s29 = scalar_lea.hbm %s2965_s15, %s1955_s30 }
  0x21   : > { %v2257_v14 = vld [vmem:[%s2954_s4 + $0x8] sm:$0xff]   ;;  %v2259_v16 = vld [vmem:[%s2954_s4] sm:$0xff]   ;;  %v2261_v35 = vld [vmem:[%s2958_s8 + $0x30] sm:$0xff]  }
  0x22   : > { %2051 = vmatpush3.bf16.msra.mxu1 %v2246_v3  ;;  %v2619_v17 = vld [vmem:[%s543_s18] sm:$0xf]  ;;  %v2262_v36 = vld [vmem:[%s2958_s8 + $0x28] sm:$0xff]   ;;  %v2264_v38 = vld [vmem:[%s2958_s8 + $0x18] sm:$0xff]  }
  0x23   : > { %2031 = vmatpush3.bf16.msra.mxu0 %v2247_v4  ;;  %2052 = vmatprep.subr.bf16.mxu1 %v2402_v1  ;;  %v2621_v18 = vld [vmem:[%s539_s21] sm:$0xf]  ;;  %v2265_v39 = vld [vmem:[%s2958_s8 + $0x10] sm:$0xff]   ;;  %v2266_v40 = vld [vmem:[%s2958_s8 + $0x8] sm:$0xff]   ;;  %s547_s21 = scalar_lea.vmem %s2952_s2, %s2588_s20  ;;  %s2404_s20 = smov [#allocation4]  }
  0x24   : > { %2032 = vmatprep.subr.bf16.mxu0 %v2402_v1  ;;  %v1826_v19 = vld [vmem:[%s2957_s7] ss:$0 sm:$0xff]  ;;  %v2268_v59 = vld [vmem:[%s2956_s6 + $0x78] sm:$0xff]   ;;  %v2269_v62 = vld [vmem:[%s2956_s6 + $0x70] sm:$0xff]   ;;  %s2314_s27 = sshll.u32 %s2404_s20, 4  ;;  %s2315_s27 = int_to_ptr.vmem [resolvable:$false] %s2314_s27 }
  0x25   : > { %v1817_v24 = vld [vmem:[%s2955_s5] ss:$0 sm:$0xff]  ;;  %v2270_v4 = vld [vmem:[%s2956_s6 + $0x68] sm:$0xff]  }
  0x26   : > { %2053 = vmatpush3.bf16.msra.mxu1 %v2248_v5  ;;  %v2263_v37 = vld [vmem:[%s2958_s8 + $0x20] sm:$0xff]  }
  0x27   : > { %2033 = vmatpush3.bf16.msra.mxu0 %v2249_v6  ;;  %2054 = vmatprep.subr.bf16.mxu1 %v2402_v1  ;;  %v2267_v41 = vld [vmem:[%s2958_s8] sm:$0xff]   ;;  %v2273_v6 = vld [vmem:[%s2956_s6 + $0x58] sm:$0xff]  }
  0x28   : > { %2034 = vmatprep.subr.bf16.mxu0 %v2402_v1  ;;  %v2677_v42 = vld [vmem:[%s547_s21] sm:$0xf]  ;;  %s1812_s21 = sshll.u32 %s2736_s24, 4 }
  0x29   : > { %v556_v43 = vld [vmem:[%s551_s25] sm:$0x3]  ;;  %s2742_s23 = scalar_lea.vmem [#allocation4], %s1812_s21 }
  0x2a   : > { %2055 = vmatpush3.bf16.msra.mxu1 %v2250_v7  ;;  %v557_v44 = vunpack.c.0.s8 %v556_v43  ;;  %v1835_v57 = vld [vmem:[%s2959_s9] ss:$0 sm:$0xff]  ;;  %v2275_v7 = vld [vmem:[%s2956_s6 + $0x50] sm:$0xff]   ;;  %s1677_s16 = sshll.u32 %s2742_s23, 4  ;;  %s2884_s16 = int_to_ptr.vmem [resolvable:$true] %s1677_s16 }
  0x2b   : > { %2035 = vmatpush3.bf16.msra.mxu0 %v2251_v8  ;;  %2056 = vmatprep.subr.bf16.mxu1 %v2402_v1  ;;  %v2271_v5 = vld [vmem:[%s2956_s6 + $0x60] sm:$0xff]   ;;  %v2277_v8 = vld [vmem:[%s2956_s6 + $0x48] sm:$0xff]   ;;  %s2310_s25 = scalar_lea.vmem %s2884_s16, 256  ;;  %p2317_p0 = scmp.lt.s32.totalorder %s2884_s16, %s2315_s27 }
  0x2c   : > { %2036 = vmatprep.subr.bf16.mxu0 %v2402_v1  ;;  %vm2687_vm2 = vcmp.ne.s32.totalorder %v557_v44, 0  ;;  %p2311_p11 = scmp.ne.s32.totalorder %s2884_s16, %s2310_s25 }
  0x2e   : > { %2057 = vmatpush3.bf16.msra.mxu1 %v2252_v9  ;;  %v2279_v9 = vld [vmem:[%s2956_s6 + $0x40] sm:$0xff]   ;;  %p2312_p12 = pnand %p2311_p11, %p2526_p5 }
  0x2f   : > { %2037 = vmatpush3.bf16.msra.mxu0 %v2253_v10  ;;  %2058 = vmatprep.subr.bf16.mxu1 %v2402_v1 }
  0x30   : > { %2038 = vmatprep.subr.bf16.mxu0 %v2402_v1  ;;  %p2313_p13 = pneg %p2312_p12 }
  0x32   : > { %2059 = vmatpush3.bf16.msra.mxu1 %v2254_v11 }
  0x33   : > { %2039 = vmatpush3.bf16.msra.mxu0 %v2255_v12  ;;  %2060 = vmatprep.subr.bf16.mxu1 %v2402_v1 }
  0x34   : > { %2040 = vmatprep.subr.bf16.mxu0 %v2402_v1 }
  0x36   : > { %2061 = vmatpush3.bf16.msra.mxu1 %v2256_v13  ;;  %v2272_v13 = vld [vmem:[%s2954_s4 + $0x78] sm:$0xff]  }
  0x37   : > { %2041 = vmatpush3.bf16.msra.mxu0 %v2257_v14  ;;  %2062 = vmatprep.subr.bf16.mxu1 %v2402_v1 }
  0x38   : > { %2042 = vmatprep.subr.bf16.mxu0 %v2402_v1 }
  0x3a   : > { %2063 = vmatpush3.bf16.msra.mxu1 %v2258_v15  ;;  %v2274_v15 = vld [vmem:[%s2954_s4 + $0x70] sm:$0xff]  }
  0x3b   : > { %2043 = vmatpush3.bf16.msra.mxu0 %v2259_v16  ;;  %2088 = vmatprep.subr.bf16.mxu1 %v2402_v1  ;;  %v2276_v16 = vld [vmem:[%s2954_s4 + $0x68] sm:$0xff]  }
  0x3c   : > { %2068 = vmatprep.subr.bf16.mxu0 %v2402_v1 }
  0x3d   : > { %2065 = vmatmul.mubr.bf16.vlgmr.msra.gmra.mxu1 %v2619_v17 }
  0x3e   : > { %2045 = vmatmul.mubr.bf16.vlgmr.msra.gmra.mxu0 %v2621_v18  ;;  %2090 = vmatprep.mubr.msk.bf16.mxu1 %vm2403_vm0, %v2402_v1 }
  0x3f   : > { %2084 = vmatprep.mubr.msk.bf16.mxu0 %vm2403_vm0, %v2402_v1  ;;  %2069 = vmatpush3.bf16.msra.mxu0 %v2260_v34  ;;  %v2295_v34 = vld [vmem:[%s2960_s10] sm:$0xff]  }
  0x40   : > { %2070 = vmatprep.subr.bf16.mxu0 %v2402_v1 }
  0x43   : > { %2071 = vmatpush3.bf16.msra.mxu0 %v2261_v35  ;;  %v1889_v35 = vld [vmem:[%s2957_s7 + $0x1] ss:$0 sm:$0xff] }
  0x44   : > { %2072 = vmatprep.subr.bf16.mxu0 %v2402_v1 }
  0x47   : > { %2073 = vmatpush3.bf16.msra.mxu0 %v2262_v36 }
  0x48   : > { %2074 = vmatprep.subr.bf16.mxu0 %v2402_v1 }
  0x4b   : > { %2075 = vmatpush3.bf16.msra.mxu0 %v2263_v37 }
  0x4c   : > { %2076 = vmatprep.subr.bf16.mxu0 %v2402_v1 }
  0x4f   : > { %2077 = vmatpush3.bf16.msra.mxu0 %v2264_v38 }
  0x50   : > { %2078 = vmatprep.subr.bf16.mxu0 %v2402_v1 }
  0x53   : > { %2079 = vmatpush3.bf16.msra.mxu0 %v2265_v39 }
  0x54   : > { %2080 = vmatprep.subr.bf16.mxu0 %v2402_v1 }
  0x57   : > { %2081 = vmatpush3.bf16.msra.mxu0 %v2266_v40 }
  0x58   : > { %2082 = vmatprep.subr.bf16.mxu0 %v2402_v1 }
  0x5b   : > { %2083 = vmatpush3.bf16.msra.mxu0 %v2267_v41 }
  0x5c   : > { %2120 = vmatprep.subr.bf16.mxu0 %v2402_v1 }
  0x5e   : > { %2085 = vmatmul.mubr.bf16.vlgmr.msra.gmra.mxu0 %v2677_v42 }
  0x5f   : > { %2136 = vmatprep.mubr.msk.bf16.mxu0 %vm2403_vm0, %v2402_v1  ;;  %2121 = vmatpush3.bf16.msra.mxu0 %v2268_v59 }
  0x60   : > { %2122 = vmatprep.subr.bf16.mxu0 %v2402_v1 }
  0x63   : > { %2123 = vmatpush3.bf16.msra.mxu0 %v2269_v62 }
  0x64   : > { %2124 = vmatprep.subr.bf16.mxu0 %v2402_v1 }
  0x67   : > { %2125 = vmatpush3.bf16.msra.mxu0 %v2270_v4 }
  0x68   : > { %2126 = vmatprep.subr.bf16.mxu0 %v2402_v1 }
  0x6b   : > { %2127 = vmatpush3.bf16.msra.mxu0 %v2271_v5 }
  0x6c   : > { %2128 = vmatprep.subr.bf16.mxu0 %v2402_v1 }
  0x6f   : > { %2129 = vmatpush3.bf16.msra.mxu0 %v2273_v6 }
  0x70   : > { %2130 = vmatprep.subr.bf16.mxu0 %v2402_v1 }
  0x73   : > { %2131 = vmatpush3.bf16.msra.mxu0 %v2275_v7 }
  0x74   : > { %2132 = vmatprep.subr.bf16.mxu0 %v2402_v1 }
  0x77   : > { %2133 = vmatpush3.bf16.msra.mxu0 %v2277_v8 }
  0x78   : > { %2134 = vmatprep.subr.bf16.mxu0 %v2402_v1 }
  0x7b   : > { %2135 = vmatpush3.bf16.msra.mxu0 %v2279_v9 }
  0x7c   : > { %2160 = vmatprep.subr.bf16.mxu0 %v2402_v1 }
  0x7e   : > { %2137 = vmatmul.mubr.bf16.vlgmr.msra.gmra.mxu0 %v2619_v17  ;;  %v2278_v17 = vld [vmem:[%s2954_s4 + $0x60] sm:$0xff]  }
  0x7f   : > { %2162 = vmatprep.mubr.msk.bf16.mxu0 %vm2403_vm0, %v2402_v1 }
  0xfd   : > { %v775_v20 = vpop.f32.mrf.mxu1 }
  0xfe   : > { %v776_v21 = vadd.f32 %v1826_v19, %v775_v20  ;;  %v664_v22 = vpop.f32.mrf.mxu0  ;;  %v2280_v19 = vld [vmem:[%s2954_s4 + $0x58] sm:$0xff]   ;;  %v2281_v20 = vld [vmem:[%s2954_s4 + $0x50] sm:$0xff]  }
  0xff   : > { %v2066_v23 = vpop.f32.mrf.mxu1  ;;  %v665_v29 = vadd.f32 %v1817_v24, %v664_v22  ;;  %v2283_v22 = vld [vmem:[%s2954_s4 + $0x40] sm:$0xff]   ;;  %v2285_v24 = vld [vmem:[%s2958_s8 + $0x70] sm:$0xff]  }
 0x100   : > { %v893_v25 = vpack.c.bf16 %v776_v21, %v776_v21  ;;  %v2046_v26 = vpop.f32.mrf.mxu0  ;;  %v2282_v21 = vld [vmem:[%s2954_s4 + $0x48] sm:$0xff]   ;;  %v2284_v23 = vld [vmem:[%s2958_s8 + $0x78] sm:$0xff]  }
 0x101   : > { %v778_v27 = vpop.f32.mrf.mxu1  ;;  %v892_v33 = vpack.c.bf16 %v665_v29, %v665_v29  ;;  %v2287_v26 = vld [vmem:[%s2958_s8 + $0x60] sm:$0xff]   ;;  %v2290_v29 = vld [vmem:[%s2958_s8 + $0x48] sm:$0xff]  }
 0x102   : > { %v899_v28 = vsel %vm894_vm1, %v893_v25, 0  ;;  %v667_v30 = vpop.f32.mrf.mxu0  ;;  %v2286_v25 = vld [vmem:[%s2958_s8 + $0x68] sm:$0xff]   ;;  %v2288_v27 = vld [vmem:[%s2958_s8 + $0x58] sm:$0xff]  }
 0x103   : > { %v2067_v31 = vpop.f32.mrf.mxu1  ;;  %2089 = vmatpush3.bf16.xpose.msra.mxu1 %v899_v28  ;;  %v2289_v28 = vld [vmem:[%s2958_s8 + $0x50] sm:$0xff]   ;;  %v2291_v30 = vld [vmem:[%s2958_s8 + $0x40] sm:$0xff]  }
 0x104   : > { %v2047_v32 = vpop.f32.mrf.mxu0  ;;  %2094 = vmatprep.subr.bf16.mxu1 %v2402_v1  ;;  %v2292_v31 = vld [vmem:[%s2960_s10 + $0x18] sm:$0xff]  }
 0x105   : > { %v2293_v32 = vld [vmem:[%s2960_s10 + $0x10] sm:$0xff]  }
 0x10a   : > { %2091 = vmatmul.mubr.msk.bf16.vlgmr.msra.gmra.mxu1 %vm894_vm1, %v892_v33  ;;  %v2294_v33 = vld [vmem:[%s2960_s10 + $0x8] sm:$0xff]  }
 0x10b   : > { %2096 = vmatprep.mubr.msk.bf16.mxu1 %vm2403_vm0, %v2402_v1 }
 0x11e   : > { %v886_v58 = vpop.f32.mrf.mxu0 }
 0x11f   : > { %v887_v60 = vadd.f32 %v1835_v57, %v886_v58 }
 0x120   : > { %v2086_v61 = vpop.f32.mrf.mxu0 }
 0x121   : > { %v956_v63 = vpack.c.bf16 %v887_v60, %v887_v60 }
 0x122   : > { %v889_v0 = vpop.f32.mrf.mxu0 }
 0x123   : > { %v962_v2 = vsel %vm960_vm4, %v956_v63, 0 }
 0x124   : > { %v2087_v3 = vpop.f32.mrf.mxu0  ;;  %2095 = vmatpush3.bf16.msra.mxu1 %v962_v2 }
 0x125   : > { %2100 = vmatprep.subr.bf16.mxu1 %v2402_v1 }
 0x13e   : > { %v1233_v36 = vpop.f32.mrf.mxu0 }
 0x13f   : > { %v1234_v37 = vadd.f32 %v1889_v35, %v1233_v36 }
 0x140   : > { %v2138_v38 = vpop.f32.mrf.mxu0 }
 0x141   : > { %v1353_v39 = vpack.c.bf16 %v1234_v37, %v1234_v37 }
 0x142   : > { %v1236_v40 = vpop.f32.mrf.mxu0 }
 0x143   : > { %v1358_v41 = vsel %vm894_vm1, %v1353_v39, 0 }
 0x144   : > { %2161 = vmatpush3.bf16.xpose.msra.mxu0 %v1358_v41 }
 0x145   : > { %2166 = vmatprep.subr.bf16.mxu0 %v2402_v1 }
 0x1ca   : > { %v935_v46 = vpop.f32.mrf.mxu1 }
 0x1cb   : > { %v941_v47 = vsel %vm2687_vm2, -1e+09, %v935_v46 }
 0x1cc   : > { %v2092_v48 = vpop.f32.mrf.mxu1  ;;  %v943_v49 = vsel %vm942_vm3, %v941_v47, -inf }
 0x1cd   : > { %944 = vmax.xlane.f32.xlu0 %v943_v49  ;;  %v1863_v49 = vld [vmem:[%s2955_s5 + $0x1] ss:$0 sm:$0xff] }
 0x1ce   : > { %v938_v50 = vpop.f32.mrf.mxu1 }
 0x1d0   : > { %v2093_v51 = vpop.f32.mrf.mxu1 }
 0x256   : > { %v945_v52 = vpop.xlane.xlu0 %944 }
 0x257   : > { %v946_v53 = vsub.f32 %v941_v47, %v945_v52 }
 0x259   : > { %v947_v54 = vmul.f32 1.442695, %v946_v53 }
 0x25b   : > { %2300 = vpow2.f32 %v947_v54 }
 0x268   : > { %v2301_v55 = vpop.eup %2300 }
 0x269   : > { %v949_v56 = vsel %vm942_vm3, %v2301_v55, 0.0 }
 0x26a   : > { %950 = vadd.xlane.f32.xlu0 %v949_v56  ;;  %v1915_v56 = vld [vmem:[%s2959_s9 + $0x1] ss:$0 sm:$0xff] }
 0x2f3   : > { %v951_v10 = vpop.xlane.xlu0 %950 }
 0x2f4   : > { %2302 = vrcp.f32 %v951_v10 }
 0x301   : > { %v2303_v11 = vpop.eup %2302 }
 0x302   : > { %v953_v12 = vmul.f32 %v2303_v11, %v2301_v55 }
 0x304   : > { %v955_v14 = vpack.c.bf16 %v953_v12, %v953_v12  ;;  %954 = vst.msk [vmem:[%s2742_s23] sm:$0xff] %vm942_vm3, %v953_v12 }
 0x306   : > { %2097 = vmatmul.mubr.msk.bf16.vlgmr.msra.gmra.mxu1 %vm942_vm3, %v955_v14 }
 0x307   : > { %2101 = vmatpush3.bf16.msra.mxu1 %v2272_v13  ;;  %2116 = vmatprep.mubr.msk.bf16.mxu1 %vm2403_vm0, %v2402_v1 }
 0x308   : > { %2102 = vmatprep.subr.bf16.mxu1 %v2402_v1 }
 0x30b   : > { %2103 = vmatpush3.bf16.msra.mxu1 %v2274_v15 }
 0x30c   : > { %2104 = vmatprep.subr.bf16.mxu1 %v2402_v1 }
 0x30f   : > { %2105 = vmatpush3.bf16.msra.mxu1 %v2276_v16 }
 0x310   : > { %2106 = vmatprep.subr.bf16.mxu1 %v2402_v1 }
 0x313   : > { %2107 = vmatpush3.bf16.msra.mxu1 %v2278_v17 }
 0x314   : > { %2108 = vmatprep.subr.bf16.mxu1 %v2402_v1 }
 0x317   : > { %2109 = vmatpush3.bf16.msra.mxu1 %v2280_v19  ;;  %v2296_v19 = vld [vmem:[%s2960_s10 + $0x38] sm:$0xff]  }
 0x318   : > { %2110 = vmatprep.subr.bf16.mxu1 %v2402_v1 }
 0x31b   : > { %2111 = vmatpush3.bf16.msra.mxu1 %v2281_v20 }
 0x31c   : > { %2112 = vmatprep.subr.bf16.mxu1 %v2402_v1 }
 0x31f   : > { %2113 = vmatpush3.bf16.msra.mxu1 %v2282_v21  ;;  %v2297_v21 = vld [vmem:[%s2960_s10 + $0x30] sm:$0xff]  }
 0x320   : > { %2114 = vmatprep.subr.bf16.mxu1 %v2402_v1 }
 0x323   : > { %2115 = vmatpush3.bf16.msra.mxu1 %v2283_v22  ;;  %v2298_v22 = vld [vmem:[%s2960_s10 + $0x28] sm:$0xff]  }
 0x324   : > { %2140 = vmatprep.subr.bf16.mxu1 %v2402_v1 }
 0x326   : > { %2117 = vmatmul.mubr.bf16.vlgmr.msra.gmra.mxu1 %v2621_v18 }
 0x327   : > { %2141 = vmatpush3.bf16.msra.mxu1 %v2284_v23  ;;  %2156 = vmatprep.mubr.msk.bf16.mxu1 %vm2403_vm0, %v2402_v1  ;;  %v2299_v23 = vld [vmem:[%s2960_s10 + $0x20] sm:$0xff]  }
 0x328   : > { %2142 = vmatprep.subr.bf16.mxu1 %v2402_v1 }
 0x32b   : > { %2143 = vmatpush3.bf16.msra.mxu1 %v2285_v24 }
 0x32c   : > { %2144 = vmatprep.subr.bf16.mxu1 %v2402_v1 }
 0x32f   : > { %2145 = vmatpush3.bf16.msra.mxu1 %v2286_v25 }
 0x330   : > { %2146 = vmatprep.subr.bf16.mxu1 %v2402_v1 }
 0x333   : > { %2147 = vmatpush3.bf16.msra.mxu1 %v2287_v26 }
 0x334   : > { %2148 = vmatprep.subr.bf16.mxu1 %v2402_v1 }
 0x337   : > { %2149 = vmatpush3.bf16.msra.mxu1 %v2288_v27 }
 0x338   : > { %2150 = vmatprep.subr.bf16.mxu1 %v2402_v1 }
 0x33b   : > { %2151 = vmatpush3.bf16.msra.mxu1 %v2289_v28 }
 0x33c   : > { %2152 = vmatprep.subr.bf16.mxu1 %v2402_v1 }
 0x33f   : > { %2153 = vmatpush3.bf16.msra.mxu1 %v2290_v29 }
 0x340   : > { %2154 = vmatprep.subr.bf16.mxu1 %v2402_v1 }
 0x343   : > { %2155 = vmatpush3.bf16.msra.mxu1 %v2291_v30  ;;  %v1945_v30 = vld [vmem:[%s2961_s11] ss:$0 sm:$0xff] }
 0x344   : > { %2184 = vmatprep.subr.bf16.mxu1 %v2402_v1 }
 0x346   : > { %2157 = vmatmul.mubr.bf16.vlgmr.msra.gmra.mxu1 %v2677_v42  ;;  %v2139_v42 = vpop.f32.mrf.mxu0 }
 0x347   : > { %2185 = vmatpush3.bf16.msra.mxu1 %v2292_v31  ;;  %2192 = vmatprep.mubr.msk.bf16.mxu1 %vm2403_vm0, %v2402_v1  ;;  %v1614_v31 = vunpack.c.l.bf16 %v2621_v18 }
 0x348   : > { %2186 = vmatprep.subr.bf16.mxu1 %v2402_v1 }
 0x34b   : > { %2187 = vmatpush3.bf16.msra.mxu1 %v2293_v32 }
 0x34c   : > { %2188 = vmatprep.subr.bf16.mxu1 %v2402_v1 }
 0x34f   : > { %2189 = vmatpush3.bf16.msra.mxu1 %v2294_v33 }
 0x350   : > { %2190 = vmatprep.subr.bf16.mxu1 %v2402_v1 }
 0x353   : > { %2191 = vmatpush3.bf16.msra.mxu1 %v2295_v34 }
 0x3c6   : > { %v998_v43 = vpop.f32.mrf.mxu1 }
 0x3c7   : > { %v1004_v44 = vpack.c.bf16 %v998_v43, %v998_v43 }
 0x3c8   : > { %v2098_v46 = vpop.f32.mrf.mxu1 }
 0x3c9   : > { %2193 = vmatmul.mubr.msk.bf16.vlgmr.msra.gmra.mxu1 %vm894_vm1, %v1004_v44 }
 0x3ca   : > { %v1001_v47 = vpop.f32.mrf.mxu1 }
 0x3cc   : > { %v2099_v48 = vpop.f32.mrf.mxu1 }
 0x3e6   : > { %v1120_v50 = vpop.f32.mrf.mxu1 }
 0x3e7   : > { %v1121_v51 = vadd.f32 %v1863_v49, %v1120_v50 }
 0x3e8   : > { %v2118_v52 = vpop.f32.mrf.mxu1 }
 0x3e9   : > { %v1352_v53 = vpack.c.bf16 %v1121_v51, %v1121_v51 }
 0x3ea   : > { %v1123_v54 = vpop.f32.mrf.mxu1 }
 0x3eb   : > { %2163 = vmatmul.mubr.msk.bf16.vlgmr.msra.gmra.mxu0 %vm894_vm1, %v1352_v53 }
 0x3ec   : > { %v2119_v55 = vpop.f32.mrf.mxu1  ;;  %2168 = vmatprep.mubr.msk.bf16.mxu0 %vm2403_vm0, %v2402_v1 }
 0x406   : > { %v1346_v57 = vpop.f32.mrf.mxu1 }
 0x407   : > { %v1347_v58 = vadd.f32 %v1915_v56, %v1346_v57 }
 0x408   : > { %v2158_v59 = vpop.f32.mrf.mxu1 }
 0x409   : > { %v1415_v60 = vpack.c.bf16 %v1347_v58, %v1347_v58 }
 0x40a   : > { %v1349_v61 = vpop.f32.mrf.mxu1 }
 0x40b   : > { %v1420_v62 = vsel %vm960_vm4, %v1415_v60, 0 }
 0x40c   : > { %v2159_v63 = vpop.f32.mrf.mxu1  ;;  %2167 = vmatpush3.bf16.msra.mxu0 %v1420_v62 }
 0x40d   : > { %2172 = vmatprep.subr.bf16.mxu0 %v2402_v1 }
 0x489   : > { %v1600_v0 = vpop.f32.mrf.mxu1 }
 0x48b   : > { %v2194_v2 = vpop.f32.mrf.mxu1 }
 0x48d   : > { %v1603_v3 = vpop.f32.mrf.mxu1 }
 0x48f   : > { %v2195_v4 = vpop.f32.mrf.mxu1 }
 0x4ab   : > { %v1394_v5 = vpop.f32.mrf.mxu0 }
 0x4ac   : > { %v1400_v6 = vsel %vm2687_vm2, -1e+09, %v1394_v5 }
 0x4ad   : > { %v2164_v7 = vpop.f32.mrf.mxu0  ;;  %v1401_v8 = vsel %vm942_vm3, %v1400_v6, -inf }
 0x4ae   : > { %1402 = vmax.xlane.f32.xlu1 %v1401_v8 }
 0x4af   : > { %v1397_v9 = vpop.f32.mrf.mxu0 }
 0x4b1   : > { %v2165_v10 = vpop.f32.mrf.mxu0 }
 0x537   : > { %v1403_v11 = vpop.xlane.xlu1 %1402 }
 0x538   : > { %v1404_v12 = vsub.f32 %v1400_v6, %v1403_v11 }
 0x53a   : > { %v1405_v13 = vmul.f32 1.442695, %v1404_v12 }
 0x53c   : > { %2304 = vpow2.f32 %v1405_v13 }
 0x549   : > { %v2305_v14 = vpop.eup %2304 }
 0x54a   : > { %v1407_v15 = vsel %vm942_vm3, %v2305_v14, 0.0 }
 0x54b   : > { %1408 = vadd.xlane.f32.xlu1 %v1407_v15 }
 0x5d4   : > { %v1409_v16 = vpop.xlane.xlu1 %1408 }
 0x5d5   : > { %2306 = vrcp.f32 %v1409_v16 }
 0x5e2   : > { %v2307_v17 = vpop.eup %2306 }
 0x5e3   : > { %v1411_v45 = vmul.f32 %v2307_v17, %v2305_v14 }
 0x5e5   : > { %v1414_v20 = vpack.c.bf16 %v1411_v45, %v1411_v45  ;;  %1925 = vst.msk [vmem:[%s2742_s23 + $0x8] sm:$0xff] %vm942_vm3, %v1411_v45  ;;  %s2316_s23 = scalar_lea.vmem %s2315_s27, 512 }
 0x5e6   : > { %p2318_p1 = scmp.lt.s32.totalorder %s2316_s23, %s2310_s25 }
 0x5e7   : > { %2169 = vmatmul.mubr.msk.bf16.vlgmr.msra.gmra.mxu0 %vm942_vm3, %v1414_v20 }
 0x5e8   : > { %2173 = vmatpush3.bf16.msra.mxu0 %v2296_v19  ;;  %2180 = vmatprep.mubr.msk.bf16.mxu0 %vm2403_vm0, %v2402_v1  ;;  %p2319_p2 = por %p2318_p1, %p2317_p0 }
 0x5e9   : > { %2174 = vmatprep.subr.bf16.mxu0 %v2402_v1 }
 0x5ea   : > { %p2320_p3 = pnand %p2319_p2, %p2313_p13 }
 0x5ec   : > { %2175 = vmatpush3.bf16.msra.mxu0 %v2297_v21 }
 0x5ed   : > { %2176 = vmatprep.subr.bf16.mxu0 %v2402_v1 }
 0x5f0   : > { %2177 = vmatpush3.bf16.msra.mxu0 %v2298_v22 }
 0x5f1   : > { %2178 = vmatprep.subr.bf16.mxu0 %v2402_v1 }
 0x5f4   : > { %2179 = vmatpush3.bf16.msra.mxu0 %v2299_v23 }
 0x6a7   : > { %v1456_v24 = vpop.f32.mrf.mxu0 }
 0x6a8   : > { %v1462_v25 = vpack.c.bf16 %v1456_v24, %v1456_v24 }
 0x6a9   : > { %v2170_v26 = vpop.f32.mrf.mxu0 }
 0x6aa   : > { %2181 = vmatmul.mubr.msk.bf16.vlgmr.msra.gmra.mxu0 %vm894_vm1, %v1462_v25 }
 0x6ab   : > { %v1459_v27 = vpop.f32.mrf.mxu0 }
 0x6ad   : > { %v2171_v28 = vpop.f32.mrf.mxu0 }
 0x76a   : > { %v1533_v29 = vpop.f32.mrf.mxu0 }
 0x76b   : > { %v1601_v1 = vadd.f32 %v1600_v0, %v1533_v29 }
 0x76c   : > { %v2182_v32 = vpop.f32.mrf.mxu0 }
 0x76d   : > { %v1613_v33 = vadd.f32 %v1945_v30, %v1601_v1 }
 0x76e   : > { %v1536_v34 = vpop.f32.mrf.mxu0 }
 0x76f   : > { %v1615_v35 = vadd.f32 %v1614_v31, %v1613_v33 }
 0x770   : > { %v2183_v36 = vpop.f32.mrf.mxu0 }
 0x771   : > { %1616 = vadd.xlane.f32.xlu0 %v1615_v35 }
 0x7fa   : > { %v1617_v37 = vpop.xlane.xlu0 %1616 }
 0x7fb   : > { %v1619_v38 = vmul.f32 0.0078125, %v1617_v37 }
 0x7fd   : > { %v1620_v39 = vsub.f32 %v1615_v35, %v1619_v38 }
 0x7ff   : > { %v1621_v40 = vmul.f32 %v1620_v39, %v1620_v39 }
 0x801   : > { %1622 = vadd.xlane.f32.xlu1 %v1621_v40 }
 0x802   : > { %2323 = shalt.err (!%p2320_p3)
}
 0x803   : > { %s2324_s26 = scalar_lea.hbm %s2882_s29, 256  ;;  %s2328_s21 = scalar_lea.hbm %s2965_s15, 512 }
 0x804   : > { %p2325_p4 = scmp.ne.s32.totalorder %s2882_s29, %s2324_s26  ;;  %p2329_p9 = scmp.lt.s32.totalorder %s2882_s29, %s2965_s15 }
 0x805   : > { %p2330_p10 = scmp.lt.s32.totalorder %s2328_s21, %s2324_s26 }
 0x806   : > { %p2326_p7 = pnand %p2325_p4, %p2526_p5 }
 0x807   : > { %p2331_p11 = por %p2330_p10, %p2329_p9 }
 0x808   : > { %p2327_p8 = pneg %p2326_p7 }
 0x80a   : > { %p2332_p12 = pnand %p2331_p11, %p2327_p8 }
 0x80c   : > { %2335 = shalt.err (!%p2332_p12)
}
 0x80d   : > { %s2405_s25 = smov 128   ;;  %s2406_s27 = smov 8   ;;  %v1946_v44 = vld [vmem:[%s2962_s12] ss:$0 sm:$0xff] }
 0x80e   : > { %s2986_s23 = scalar_lea.sflag [#allocation5], %s2736_s24  ;;  %s1811_s17 = sshll.u32 %s2736_s24, 3  ;;  %v1947_v47 = vld [vmem:[%s2963_s13] ss:$0 sm:$0xff] }
 0x80f   : > { %2197 = dma.vmem_to_hbm [thread:$0]  (%p2526_p5), %s2884_s16, 256, %s2882_s29, %s2986_s23, %s2405_s25, %s2405_s25, %s2406_s27  }
 0x810   : > { %s1950_s20 = sshll.u32 %s2509_s22, 7  ;;  %s528_s0 = scalar_lea.vmem [#allocation2], %s1811_s17 }
 0x811   : > { %s1664_s16 = sshll.u32 %s528_s0, 4  ;;  %s1662_s27 = scalar_lea.hbm %s2964_s14, %s1950_s20  ;;  %s1665_s16 = int_to_ptr.vmem [resolvable:$true] %s1664_s16 }
 0x812   : > { %s1646_s23 = scalar_lea.sflag [#allocation3], %s2736_s24  ;;  %s2336_s1 = scalar_lea.vmem %s1665_s16, 128 }
 0x813   : > { %p2337_p13 = scmp.ne.s32.totalorder %s1665_s16, %s2336_s1  ;;  %s2407_s26 = smov [#allocation2]  }
 0x814   : > { %s2340_s30 = sshll.u32 %s2407_s26, 4  ;;  %s2341_s30 = int_to_ptr.vmem [resolvable:$false] %s2340_s30 }
 0x815   : > { %p2338_p0 = pnand %p2337_p13, %p2526_p5  ;;  %s2342_s22 = scalar_lea.vmem %s2341_s30, 256 }
 0x816   : > { %p2343_p2 = scmp.lt.s32.totalorder %s1665_s16, %s2341_s30  ;;  %p2344_p3 = scmp.lt.s32.totalorder %s2342_s22, %s2336_s1 }
 0x817   : > { %p2339_p1 = pneg %p2338_p0 }
 0x818   : > { %p2345_p4 = por %p2344_p3, %p2343_p2 }
 0x81a   : > { %p2346_p7 = pnand %p2345_p4, %p2339_p1 }
 0x88a   : > { %v1623_v18 = vpop.xlane.xlu1 %1622 }
 0x88b   : > { %v1624_v41 = vmul.f32 0.0078125, %v1623_v18 }
 0x88d   : > { %v1625_v42 = vadd.f32 1e-05, %v1624_v41 }
 0x88f   : > { %2308 = vrsqrt.f32 %v1625_v42 }
 0x89c   : > { %v2309_v43 = vpop.eup %2308 }
 0x89d   : > { %v1627_v46 = vmul.f32 %v2309_v43, %v1620_v39 }
 0x89f   : > { %v1635_v48 = vmul.f32 %v1946_v44, %v1627_v46 }
 0x8a1   : > { %v1643_v49 = vadd.f32 %v1947_v47, %v1635_v48 }
 0x8a3   : > { %1644 = vst [vmem:[%s528_s0] sm:$0xff] %v1643_v49 }
 0x8a4   : > { %2349 = shalt.err (!%p2346_p7)
}
 0x8a5   : > { %s2350_s17 = scalar_lea.hbm %s1662_s27, 128  ;;  %s2354_s18 = scalar_lea.hbm %s2964_s14, 256 }
 0x8a6   : > { %p2351_p8 = scmp.ne.s32.totalorder %s1662_s27, %s2350_s17  ;;  %p2355_p11 = scmp.lt.s32.totalorder %s1662_s27, %s2964_s14 }
 0x8a7   : > { %p2356_p12 = scmp.lt.s32.totalorder %s2354_s18, %s2350_s17 }
 0x8a8   : > { %p2352_p9 = pnand %p2351_p8, %p2526_p5 }
 0x8a9   : > { %p2357_p13 = por %p2356_p12, %p2355_p11 }
 0x8aa   : > { %p2353_p10 = pneg %p2352_p9 }
 0x8ac   : > { %p2358_p0 = pnand %p2357_p13, %p2353_p10 }
 0x8ae   : > { %2361 = shalt.err (!%p2358_p0)
}
 0x8af   : > { %2196 = dma.vmem_to_hbm [thread:$0]  (%p2526_p5), %s1665_s16, 128, %s1662_s27, %s1646_s23  }
 0x8b0 PF: > { %s2987_s1 = sld [smem:[#allocation10_spill]] }
 0x8b1   : > { %s2988_s29 = sld [smem:[#allocation8_spill]] }
 0x8b6   : > { %p2207_p1 = scmp.ge.s32.totalorder %s2987_s1, 2 }
 0x8b7   : > { %s1692_s26 = sand.u32 1, %s2988_s29  }
 0x8b8   : > { %p2201_p2 = pnand %p2207_p1, %p2530_p6  ;;  %s1693_s30 = scalar_lea.sflag [#allocation3], %s1692_s26 }
 0x8ba   : > { %p2202_p3 = pneg %p2201_p2 }
 0x8bc   : > { %2379 = dma.done.wait (%p2202_p3), %s1693_s30, 128  }
 0x8bd   : > { %2381 = vsyncadd (%p2202_p3), %s1693_s30, 4294967168  ;;  %s1702_s22 = scalar_lea.sflag [#allocation5], %s1692_s26 }
 0x8be   : > { %2383 = dma.done.wait (%p2202_p3), %s1702_s22, 256  }
 0x8bf   : > { %2385 = vsyncadd (%p2202_p3), %s1702_s22, 4294967040  ;;  %s2990_s21 = sld [smem:[#allocation11_spill]]  ;;  %s2993_s18 = smov %s2392_s19 }
 0x8c0   : > { %s2991_s17 = sld [smem:[#allocation9_spill]] }
 0x8c1   : > { %s2992_s20 = sld [smem:[#allocation12_spill]] }
 0x8c5   : > { %p29_p5 = scmp.ge.s32.totalorder %s2990_s21, 4  }
 0x8c6   : > { %s2994_s19 = smov %s2991_s17 }
 0x8c7   :  { %31 = sbr.rel (!%p29_p5) target bundleno = 8 (0x8), region = 145 }
 0x8cc   :  { %1707 = vsyncpa [#allocation3], 1 }
 0x8cd   :  { %1709 = vsyncpa [#allocation3 + $0x1], 1 }
 0x8ce   :  { %1710 = vsyncpa [#allocation5], 1 }
 0x8cf   :  { %1712 = vsyncpa [#allocation5 + $0x1], 1 }

</bundles_post_ra>
